<compile_context>
chip_gen: v7x
topology: tpu7x:2x2x1
jax: 0.10.0
libtpu: 0.0.40
codegen_flags: <defaults>
</compile_context>

<pallas_src>
import functools

import jax
import jax.numpy as jnp
from jax import lax
from jax.experimental import pallas as pl
from jax.experimental.pallas import tpu as pltpu

EPS = 1e-5


def _round_up(x, m):
    return (x + m - 1) // m * m


def _device_kind():
    try:
        return jax.devices()[0].device_kind.lower()
    except Exception:
        return ""


def _th_candidates(H):
    """Full H first, then multiples of 128 that divide H, largest to smallest."""
    cands = [H]
    t = (H // 128) * 128
    while t >= 128:
        if t != H and H % t == 0:
            cands.append(t)
        t -= 128
    return cands


def _vmem_bytes(tm, th, C, x_itemsize, out_itemsize):
    """Rough per-step VMEM footprint: double-buffered I/O tiles + scratch +
    the f32 elementwise intermediates of the SiGLU (worst case)."""
    weights = 2 * (3 * C * th) * 2          # a/b expand + project chunks, bf16, x2 buffers
    x_tile = 2 * tm * C * x_itemsize        # input row tile
    o_tile = 2 * tm * C * out_itemsize      # output row tile
    scratch = tm * C * (2 + 4)              # xn (bf16) + residual/accumulator (f32)
    inter = 3 * tm * th * 4                 # a / b / g temporaries (f32 worst case)
    return weights + x_tile + o_tile + scratch + inter


def mlp_block_kernel(x_ref, wea_ref, web_ref, wp_ref, o_ref,
                     xn_ref, acc_ref, *, siglu_bf16):
    """Grid = (row tile i, hidden chunk j). j is the projection reduction
    axis (innermost, "arbitrary"); the output row tile stays resident over j.
    With th == H (the common case) j collapses to a single step and the
    weights are fully resident across all row tiles."""
    j = pl.program_id(1)

    @pl.when(j == 0)
    def _():
        # LayerNorm in f32 (two-pass variance, like torch) + residual init.
        x = x_ref[...].astype(jnp.float32)                       # (tm, C)
        mean = jnp.mean(x, axis=-1, keepdims=True)
        xc = x - mean
        var = jnp.mean(xc * xc, axis=-1, keepdims=True)
        xn = xc * lax.rsqrt(var + EPS)                            # gamma folded into weights
        xn_ref[...] = xn.astype(xn_ref.dtype)                     # bf16 for the MXU
        acc_ref[...] = x                                          # residual (f32)

    xn = xn_ref[...]                                              # (tm, C) bf16
    # Expand: two half-matmuls (a-half / b-half) -> no lane-slicing of (tm, 2H).
    a = jnp.dot(xn, wea_ref[...], preferred_element_type=jnp.float32)   # (tm, th)
    b = jnp.dot(xn, web_ref[...], preferred_element_type=jnp.float32)   # (tm, th)
    if siglu_bf16:
        # v6e/v7x: bf16-native VPU/EUP -> halve elementwise work / vreg pressure.
        a16 = a.astype(jnp.bfloat16)
        b16 = b.astype(jnp.bfloat16)
        g = a16 * (b16 * jax.nn.sigmoid(b16))                     # bf16 SiGLU
    else:
        # v5e: no bf16 vector path -> keep elementwise math in f32.
        g = (a * (b * jax.nn.sigmoid(b))).astype(jnp.bfloat16)
    # Project this hidden chunk, accumulate in f32.
    acc_ref[...] += jnp.dot(g, wp_ref[...], preferred_element_type=jnp.float32)

    @pl.when(j == pl.num_programs(1) - 1)
    def _():
        o_ref[...] = acc_ref[...].astype(o_ref.dtype)


def prepare_mlp_params(gamma, w_expand, w_project):
    """One-time parameter prep (call at init, NOT per forward): split the
    expand weight into a/b halves, fold the LayerNorm gamma in, transpose to
    row-major matmul layout and cast to bf16 (MXU-native)."""
    two_h, C = w_expand.shape
    H = two_h // 2
    g = gamma.astype(jnp.float32).reshape(C, 1)
    we_a_t = (w_expand[:H, :].astype(jnp.float32).T * g).astype(jnp.bfloat16)  # (C, H)
    we_b_t = (w_expand[H:, :].astype(jnp.float32).T * g).astype(jnp.bfloat16)  # (C, H)
    wp_t = w_project.T.astype(jnp.bfloat16)                                    # (H, C)
    return we_a_t, we_b_t, wp_t


@functools.partial(jax.jit, static_argnames=("tm_target",))
def mlp_block(x, we_a_t, we_b_t, wp_t, *, tm_target=512):
    """x: [B, T, C].  we_a_t / we_b_t: [C, H] (gamma-folded, bf16),
    wp_t: [H, C] (bf16) -- produced once by `prepare_mlp_params`."""
    B, T, C = x.shape
    M = B * T
    H = we_a_t.shape[1]

    kind = _device_kind()
    is_v7 = "v7" in kind
    is_v5 = "v5" in kind
    siglu_bf16 = not is_v5                    # bf16 VPU/EUP only on v6e/v7x

    x_it = x.dtype.itemsize
    o_it = x.dtype.itemsize
    vmem_cap = (48 << 20) if is_v7 else (100 << 20)
    budget = int(0.75 * vmem_cap)

    # Tile selection: biggest row tile / full-H hidden chunk within the budget.
    tm = max(8, min(tm_target, _round_up(M, 8)))
    th = None
    while True:
        for cand in _th_candidates(H):
            if _vmem_bytes(tm, cand, C, x_it, o_it) <= budget:
                th = cand
                break
        if th is not None or tm <= 128:
            break
        tm = max(128, tm // 2)
    if th is None:
        th = _th_candidates(H)[-1]

    x2d = x.reshape(M, C)
    Mp = _round_up(M, tm)
    if Mp != M:
        x2d = jnp.pad(x2d, ((0, Mp - M), (0, 0)))

    grid = (Mp // tm, H // th)

    vmem_limit = int(min(max(int(_vmem_bytes(tm, th, C, x_it, o_it) * 1.25),
                             32 << 20), vmem_cap))

    row_sem = pltpu.PARALLEL
    if is_v7 and grid[0] >= 2 and grid[0] % 2 == 0 and hasattr(pltpu, "CORE_PARALLEL"):
        row_sem = pltpu.CORE_PARALLEL         # shard row tiles across both TensorCores

    kernel = functools.partial(mlp_block_kernel, siglu_bf16=siglu_bf16)

    out2d = pl.pallas_call(
        kernel,
        out_shape=jax.ShapeDtypeStruct((Mp, C), x.dtype),
        grid_spec=pltpu.PrefetchScalarGridSpec(
            num_scalar_prefetch=0,
            grid=grid,
            in_specs=[
                pl.BlockSpec((tm, C), lambda i, j: (i, 0)),   # x rows (resident over j)
                pl.BlockSpec((C, th), lambda i, j: (0, j)),   # gamma*W_expand^T a-half
                pl.BlockSpec((C, th), lambda i, j: (0, j)),   # gamma*W_expand^T b-half
                pl.BlockSpec((th, C), lambda i, j: (j, 0)),   # W_project^T chunk
            ],
            out_specs=pl.BlockSpec((tm, C), lambda i, j: (i, 0)),
            scratch_shapes=[
                pltpu.VMEM((tm, C), jnp.bfloat16),            # cached normalized rows
                pltpu.VMEM((tm, C), jnp.float32),             # residual + f32 accumulator
            ],
        ),
        compiler_params=pltpu.CompilerParams(
            dimension_semantics=(row_sem, pltpu.ARBITRARY),
            vmem_limit_bytes=vmem_limit),
    )(x2d, we_a_t, we_b_t, wp_t)

    return out2d[:M].reshape(B, T, C)


def mlp_block_ref_matched(x, gamma, w_expand, w_project, siglu_bf16):
    """Pure-JAX reference mirroring the kernel's numerics (gamma folded into
    bf16 weights, f32 LayerNorm stats + matmul accumulation)."""
    xf = x.astype(jnp.float32)
    mean = jnp.mean(xf, axis=-1, keepdims=True)
    xc = xf - mean
    var = jnp.mean(xc * xc, axis=-1, keepdims=True)
    xn = (xc * lax.rsqrt(var + EPS)).astype(jnp.bfloat16)
    H = w_expand.shape[0] // 2
    g32 = gamma.astype(jnp.float32)
    wa = (w_expand[:H].astype(jnp.float32) * g32[None, :]).astype(jnp.bfloat16)
    wb = (w_expand[H:].astype(jnp.float32) * g32[None, :]).astype(jnp.bfloat16)
    a = jnp.dot(xn, wa.T, preferred_element_type=jnp.float32)
    b = jnp.dot(xn, wb.T, preferred_element_type=jnp.float32)
    if siglu_bf16:
        a16, b16 = a.astype(jnp.bfloat16), b.astype(jnp.bfloat16)
        g = a16 * (b16 * jax.nn.sigmoid(b16))
    else:
        g = (a * (b * jax.nn.sigmoid(b))).astype(jnp.bfloat16)
    y = jnp.dot(g, w_project.T.astype(jnp.bfloat16),
                preferred_element_type=jnp.float32)
    return (y + xf).astype(x.dtype)


def mlp_block_ref_f32(x, gamma, w_expand, w_project):
    """Pure-f32 reference matching the PyTorch forward exactly."""
    residual = x
    mean = jnp.mean(x, axis=-1, keepdims=True)
    var = jnp.mean((x - mean) ** 2, axis=-1, keepdims=True)
    xn = (x - mean) / jnp.sqrt(var + EPS) * gamma
    h = xn @ w_expand.T
    half = h.shape[-1] // 2
    a, b = h[..., :half], h[..., half:]
    g = a * (b * jax.nn.sigmoid(b))
    y = g @ w_project.T
    return y + residual


if __name__ == "__main__":
    # Small, lane-aligned shapes consistent with the module (C multiple of 128).
    B, T, C = 2, 8, 128
    E = 3                       # expansion_factor
    H = E * C                   # 384
    TWO_H = 2 * H               # 768

    key = jax.random.PRNGKey(0)
    kx, ke, kp = jax.random.split(key, 3)

    x = jax.random.normal(kx, (B, T, C), dtype=jnp.float32)
    # nn.Linear (out, in) layout, no bias.
    w_expand = jax.random.normal(ke, (TWO_H, C), dtype=jnp.float32) * (C ** -0.5)
    w_project = jax.random.normal(kp, (C, H), dtype=jnp.float32) * (H ** -0.5)
    gamma = jnp.ones((C,), dtype=jnp.float32)   # LayerNorm weight (bias=False)

    # One-time parameter prep, hoisted out of the forward path.
    we_a_t, we_b_t, wp_t = prepare_mlp_params(gamma, w_expand, w_project)

    out = mlp_block(x, we_a_t, we_b_t, wp_t)
    out = jax.block_until_ready(out)
    assert out.shape == (B, T, C)

    # Tight check against a reference with matching (bf16-weight) numerics.
    siglu_bf16 = "v5" not in _device_kind()
    ref = mlp_block_ref_matched(x, gamma, w_expand, w_project, siglu_bf16)
    assert jnp.allclose(out, ref, rtol=2e-2, atol=2e-2), (
        f"mismatch vs bf16-matched reference: "
        f"max abs diff = {jnp.max(jnp.abs(out - ref))}")

    # Loose sanity check against the exact f32 PyTorch semantics.
    ref32 = mlp_block_ref_f32(x, gamma, w_expand, w_project)
    assert jnp.allclose(out, ref32, rtol=1e-1, atol=1e-1), (
        f"mismatch vs f32 reference: "
        f"max abs diff = {jnp.max(jnp.abs(out - ref32))}")

    print("KERNEL_OK")
</pallas_src>

<mosaic_0001>
module attributes {stable_mosaic.version = 11 : i64} {
  func.func @mlp_block_kernel(%arg0: i32, %arg1: i32, %arg2: memref<16x128xf32, #tpu.memory_space<vmem>>, %arg3: memref<128x384xbf16, #tpu.memory_space<vmem>>, %arg4: memref<128x384xbf16, #tpu.memory_space<vmem>>, %arg5: memref<384x128xbf16, #tpu.memory_space<vmem>>, %arg6: memref<16x128xf32, #tpu.memory_space<vmem>>, %arg7: memref<16x128xbf16, #tpu.memory_space<vmem>>, %arg8: memref<16x128xf32, #tpu.memory_space<vmem>>) attributes {dimension_semantics = [#tpu.dimension_semantics<parallel>, #tpu.dimension_semantics<arbitrary>], iteration_bounds = array<i64: 1, 1>, scalar_prefetch = 0 : i64, scratch_operands = 2 : i64, tpu.core_type = #tpu.core_type<tc>, window_params = [{transform_indices = @transform_0, window_bounds = array<i64: 16, 128>}, {transform_indices = @transform_1, window_bounds = array<i64: 128, 384>}, {transform_indices = @transform_2, window_bounds = array<i64: 128, 384>}, {transform_indices = @transform_3, window_bounds = array<i64: 384, 128>}, {transform_indices = @transform_4, window_bounds = array<i64: 16, 128>}]} {
    %c0_i32 = arith.constant 0 : i32
    %0 = arith.cmpi eq, %arg1, %c0_i32 : i32
    %1 = arith.extui %0 : i1 to i32
    %c0_i32_0 = arith.constant 0 : i32
    %2 = arith.cmpi ne, %1, %c0_i32_0 : i32
    scf.if %2 {
      %c0_17 = arith.constant 0 : index
      %c0_18 = arith.constant 0 : index
      %25 = vector.load %arg2[%c0_17, %c0_18] : memref<16x128xf32, #tpu.memory_space<vmem>>, vector<16x128xf32>
      %cst_19 = arith.constant dense<0.000000e+00> : vector<16xf32>
      %26 = vector.multi_reduction <add>, %25, %cst_19 [1] : vector<16x128xf32> to vector<16xf32>
      %27 = vector.shape_cast %26 : vector<16xf32> to vector<16x1xf32>
      %cst_20 = arith.constant 1.280000e+02 : f32
      %28 = vector.broadcast %cst_20 : f32 to vector<16x1xf32>
      %29 = arith.divf %27, %28 : vector<16x1xf32>
      %30 = vector.broadcast %29 : vector<16x1xf32> to vector<16x128xf32>
      %31 = arith.subf %25, %30 : vector<16x128xf32>
      %32 = arith.mulf %31, %31 : vector<16x128xf32>
      %cst_21 = arith.constant dense<0.000000e+00> : vector<16xf32>
      %33 = vector.multi_reduction <add>, %32, %cst_21 [1] : vector<16x128xf32> to vector<16xf32>
      %34 = vector.shape_cast %33 : vector<16xf32> to vector<16x1xf32>
      %cst_22 = arith.constant 1.280000e+02 : f32
      %35 = vector.broadcast %cst_22 : f32 to vector<16x1xf32>
      %36 = arith.divf %34, %35 : vector<16x1xf32>
      %cst_23 = arith.constant 9.99999974E-6 : f32
      %37 = vector.broadcast %cst_23 : f32 to vector<16x1xf32>
      %38 = arith.addf %36, %37 : vector<16x1xf32>
      %39 = math.rsqrt %38 : vector<16x1xf32>
      %40 = vector.broadcast %39 : vector<16x1xf32> to vector<16x128xf32>
      %41 = arith.mulf %31, %40 : vector<16x128xf32>
      %42 = arith.truncf %41 : vector<16x128xf32> to vector<16x128xbf16>
      %c0_24 = arith.constant 0 : index
      %c0_25 = arith.constant 0 : index
      %43 = vector.load %arg7[%c0_24, %c0_25] : memref<16x128xbf16, #tpu.memory_space<vmem>>, vector<16x128xbf16>
      tpu.vector_store %arg7[%c0_24, %c0_25], %42 {strides = array<i32>} : memref<16x128xbf16, #tpu.memory_space<vmem>>, vector<16x128xbf16>,
      %c0_26 = arith.constant 0 : index
      %c0_27 = arith.constant 0 : index
      %44 = vector.load %arg8[%c0_26, %c0_27] : memref<16x128xf32, #tpu.memory_space<vmem>>, vector<16x128xf32>
      tpu.vector_store %arg8[%c0_26, %c0_27], %25 {strides = array<i32>} : memref<16x128xf32, #tpu.memory_space<vmem>>, vector<16x128xf32>,
    } else {
    }
    %c0 = arith.constant 0 : index
    %c0_1 = arith.constant 0 : index
    %3 = vector.load %arg7[%c0, %c0_1] : memref<16x128xbf16, #tpu.memory_space<vmem>>, vector<16x128xbf16>
    %c0_2 = arith.constant 0 : index
    %c0_3 = arith.constant 0 : index
    %4 = vector.load %arg3[%c0_2, %c0_3] : memref<128x384xbf16, #tpu.memory_space<vmem>>, vector<128x384xbf16>
    %cst = arith.constant dense<0.000000e+00> : vector<16x384xf32>
    %5 = tpu.matmul %3, %4, %cst {dimension_numbers = #tpu.dot_dimension_numbers<[1], [0], [0], [1], [0, 0, 1, 1], [], []>} : vector<16x128xbf16>, vector<128x384xbf16>, vector<16x384xf32> -> vector<16x384xf32>
    %c0_4 = arith.constant 0 : index
    %c0_5 = arith.constant 0 : index
    %6 = vector.load %arg4[%c0_4, %c0_5] : memref<128x384xbf16, #tpu.memory_space<vmem>>, vector<128x384xbf16>
    %cst_6 = arith.constant dense<0.000000e+00> : vector<16x384xf32>
    %7 = tpu.matmul %3, %6, %cst_6 {dimension_numbers = #tpu.dot_dimension_numbers<[1], [0], [0], [1], [0, 0, 1, 1], [], []>} : vector<16x128xbf16>, vector<128x384xbf16>, vector<16x384xf32> -> vector<16x384xf32>
    %8 = arith.truncf %5 : vector<16x384xf32> to vector<16x384xbf16>
    %9 = arith.truncf %7 : vector<16x384xf32> to vector<16x384xbf16>
    %10 = arith.negf %9 : vector<16x384xbf16>
    %11 = math.exp %10 : vector<16x384xbf16>
    %cst_7 = arith.constant 1.000000e+00 : bf16
    %12 = vector.broadcast %cst_7 : bf16 to vector<16x384xbf16>
    %13 = arith.addf %12, %11 : vector<16x384xbf16>
    %14 = arith.divf %12, %13 : vector<16x384xbf16>
    %15 = arith.mulf %9, %14 : vector<16x384xbf16>
    %16 = arith.mulf %8, %15 : vector<16x384xbf16>
    %c0_8 = arith.constant 0 : index
    %c0_9 = arith.constant 0 : index
    %17 = vector.load %arg8[%c0_8, %c0_9] : memref<16x128xf32, #tpu.memory_space<vmem>>, vector<16x128xf32>
    %c0_10 = arith.constant 0 : index
    %c0_11 = arith.constant 0 : index
    %18 = vector.load %arg5[%c0_10, %c0_11] : memref<384x128xbf16, #tpu.memory_space<vmem>>, vector<384x128xbf16>
    %cst_12 = arith.constant dense<0.000000e+00> : vector<16x128xf32>
    %19 = tpu.matmul %16, %18, %cst_12 {dimension_numbers = #tpu.dot_dimension_numbers<[1], [0], [0], [1], [0, 0, 1, 1], [], []>} : vector<16x384xbf16>, vector<384x128xbf16>, vector<16x128xf32> -> vector<16x128xf32>
    %20 = arith.addf %17, %19 : vector<16x128xf32>
    %c0_13 = arith.constant 0 : index
    %c0_14 = arith.constant 0 : index
    %21 = vector.load %arg8[%c0_13, %c0_14] : memref<16x128xf32, #tpu.memory_space<vmem>>, vector<16x128xf32>
    tpu.vector_store %arg8[%c0_13, %c0_14], %20 {strides = array<i32>} : memref<16x128xf32, #tpu.memory_space<vmem>>, vector<16x128xf32>,
    %c0_i32_15 = arith.constant 0 : i32
    %22 = arith.cmpi eq, %arg1, %c0_i32_15 : i32
    %23 = arith.extui %22 : i1 to i32
    %c0_i32_16 = arith.constant 0 : i32
    %24 = arith.cmpi ne, %23, %c0_i32_16 : i32
    scf.if %24 {
      %c0_17 = arith.constant 0 : index
      %c0_18 = arith.constant 0 : index
      %25 = vector.load %arg8[%c0_17, %c0_18] : memref<16x128xf32, #tpu.memory_space<vmem>>, vector<16x128xf32>
      %c0_19 = arith.constant 0 : index
      %c0_20 = arith.constant 0 : index
      %26 = vector.load %arg6[%c0_19, %c0_20] : memref<16x128xf32, #tpu.memory_space<vmem>>, vector<16x128xf32>
      tpu.vector_store %arg6[%c0_19, %c0_20], %25 {strides = array<i32>} : memref<16x128xf32, #tpu.memory_space<vmem>>, vector<16x128xf32>,
    } else {
    }
    return
  }
  func.func @transform_0(%arg0: i32, %arg1: i32) -> (i32, i32) {
    %c0_i32 = arith.constant 0 : i32
    %c0_i32_0 = arith.constant 0 : i32
    return %arg0, %c0_i32 : i32, i32
  }
  func.func @transform_1(%arg0: i32, %arg1: i32) -> (i32, i32) {
    %c0_i32 = arith.constant 0 : i32
    %c0_i32_0 = arith.constant 0 : i32
    return %c0_i32, %arg1 : i32, i32
  }
  func.func @transform_2(%arg0: i32, %arg1: i32) -> (i32, i32) {
    %c0_i32 = arith.constant 0 : i32
    %c0_i32_0 = arith.constant 0 : i32
    return %c0_i32, %arg1 : i32, i32
  }
  func.func @transform_3(%arg0: i32, %arg1: i32) -> (i32, i32) {
    %c0_i32 = arith.constant 0 : i32
    %c0_i32_0 = arith.constant 0 : i32
    return %arg1, %c0_i32 : i32, i32
  }
  func.func @transform_4(%arg0: i32, %arg1: i32) -> (i32, i32) {
    %c0_i32 = arith.constant 0 : i32
    %c0_i32_0 = arith.constant 0 : i32
    return %arg0, %c0_i32 : i32, i32
  }
}

</mosaic_0001>

<bundles_post_ra>
// kernel: mlp_block.1
= control target key start
LH: loop header
LB: loop body
LE: loop exit
PB: predicated region body
PF: predicated region fallthrough
CT: control target
= control target key end

     0   :  { %9 = vsyncpa [#allocation5], 0  ;;  %s1514_s0 = inlined_call_operand.hbm [shape: f32[16,128], index: 0, kind: input, shape index: {}]   ;;  %s1515_s1 = inlined_call_operand.hbm [shape: bf16[128,384], index: 1, kind: input, shape index: {}]   ;;  %s1516_s2 = inlined_call_operand.hbm [shape: bf16[128,384], index: 2, kind: input, shape index: {}]   ;;  %s1517_s3 = inlined_call_operand.hbm [shape: bf16[384,128], index: 3, kind: input, shape index: {}]   ;;  %s1518_s4 = inlined_call_operand.hbm [shape: f32[16,128], index: 4, kind: output, shape index: {}]  }
   0x1   :  { %10 = vsyncpa [#allocation8], 0 }
   0x2   :  { %11 = vsyncpa [#allocation11], 0 }
   0x3   :  { %12 = vsyncpa [#allocation6], 0  ;;  %s1356_s15 = smov [#allocation7]   ;;  %s1238_s19 = scalar_lea.hbm %s1515_s1, 3072 }
   0x4   :  { %s30_s16 = sshll.u32 %s1356_s15, 4  ;;  %p1239_p0 = scmp.ne.s32.totalorder %s1515_s1, %s1238_s19  ;;  %s31_s16 = int_to_ptr.vmem [resolvable:$true] %s30_s16 }
   0x5   :  { %p1242_p1 = scmp.lt.u32.totalorder %s1238_s19, %s1515_s1 }
   0x7   :  { %p1244_p2 = pnand %p1242_p1, %p1239_p0 }
   0x9   :  { %1247 = shalt.err (!%p1244_p2)
}
   0xa   :  { %s1248_s24 = scalar_lea.vmem %s31_s16, 3072  ;;  %p1253_p4 = scmp.lt.s32.totalorder %s31_s16, %s31_s16 }
   0xb   :  { %p1249_p3 = scmp.ne.s32.totalorder %s31_s16, %s1248_s24  ;;  %p1254_p5 = scmp.lt.s32.totalorder %s1248_s24, %s1248_s24 }
   0xd   :  { %p1255_p6 = por %p1254_p5, %p1253_p4 }
   0xf   :  { %p1256_p7 = pnand %p1255_p6, %p1249_p3 }
  0x11   :  { %1259 = shalt.err (!%p1256_p7)
}
  0x12   :  { %s1357_s25 = smov 192   ;;  %s1358_s26 = smov 12  }
  0x13   :  { %36 = dma.hbm_to_vmem [thread:$0]  %s1515_s1, 3072, %s31_s16, [#allocation8], %s1357_s25, %s1357_s25, %s1358_s26  }
  0x14   :  { %s1359_s29 = smov [#allocation4]   ;;  %s1260_s7 = scalar_lea.hbm %s1514_s0, 256 }
  0x15   :  { %s18_s30 = sshll.u32 %s1359_s29, 4  ;;  %p1261_p8 = scmp.ne.s32.totalorder %s1514_s0, %s1260_s7  ;;  %s19_s30 = int_to_ptr.vmem [resolvable:$true] %s18_s30 }
  0x16   :  { %p1264_p9 = scmp.lt.u32.totalorder %s1260_s7, %s1514_s0 }
  0x18   :  { %p1266_p10 = pnand %p1264_p9, %p1261_p8 }
  0x1a   :  { %1269 = shalt.err (!%p1266_p10)
}
  0x1b   :  { %s1270_s12 = scalar_lea.vmem %s19_s30, 256  ;;  %p1275_p12 = scmp.lt.s32.totalorder %s19_s30, %s19_s30 }
  0x1c   :  { %p1271_p11 = scmp.ne.s32.totalorder %s19_s30, %s1270_s12  ;;  %p1276_p13 = scmp.lt.s32.totalorder %s1270_s12, %s1270_s12 }
  0x1e   :  { %p1277_p0 = por %p1276_p13, %p1275_p12 }
  0x20   :  { %p1278_p1 = pnand %p1277_p0, %p1271_p11 }
  0x22   :  { %1281 = shalt.err (!%p1278_p1)
}
  0x23   :  { %s1360_s1 = smov 128   ;;  %s1361_s13 = smov 8  }
  0x24   :  { %24 = dma.hbm_to_vmem [thread:$0]  %s1514_s0, 256, %s19_s30, [#allocation5], %s1360_s1, %s1360_s1, %s1361_s13  }
  0x25   :  { %s1362_s16 = smov [#allocation9]   ;;  %s1363_s18 = smov [#allocation10]  }
  0x26   :  { %s42_s17 = sshll.u32 %s1362_s16, 4  ;;  %s54_s19 = sshll.u32 %s1363_s18, 4  ;;  %s43_s17 = int_to_ptr.vmem [resolvable:$true] %s42_s17  ;;  %s1425_s19 = int_to_ptr.vmem [resolvable:$true] %s54_s19 }
  0x27   :  { %s1282_s22 = scalar_lea.hbm %s1516_s2, 3072 }
  0x28   :  { %p1283_p2 = scmp.ne.s32.totalorder %s1516_s2, %s1282_s22  ;;  %p1286_p3 = scmp.lt.u32.totalorder %s1282_s22, %s1516_s2 }
  0x2a   :  { %p1288_p4 = pnand %p1286_p3, %p1283_p2 }
  0x2c   :  { %1291 = shalt.err (!%p1288_p4)
}
  0x2d   :  { %s1292_s0 = scalar_lea.vmem %s43_s17, 3072  ;;  %p1297_p6 = scmp.lt.s32.totalorder %s43_s17, %s43_s17 }
  0x2e   :  { %p1293_p5 = scmp.ne.s32.totalorder %s43_s17, %s1292_s0  ;;  %p1298_p7 = scmp.lt.s32.totalorder %s1292_s0, %s1292_s0 }
  0x30   :  { %p1299_p8 = por %p1298_p7, %p1297_p6 }
  0x32   :  { %p1300_p9 = pnand %p1299_p8, %p1293_p5 }
  0x34   :  { %1303 = shalt.err (!%p1300_p9)
}
  0x35   :  { %48 = dma.hbm_to_vmem [thread:$0]  %s1516_s2, 3072, %s43_s17, [#allocation8], %s1357_s25, %s1357_s25, %s1358_s26  }
  0x36   :  { %s1304_s7 = scalar_lea.hbm %s1517_s3, 3072 }
  0x37   :  { %p1305_p10 = scmp.ne.s32.totalorder %s1517_s3, %s1304_s7  ;;  %p1308_p11 = scmp.lt.u32.totalorder %s1304_s7, %s1517_s3 }
  0x39   :  { %p1310_p12 = pnand %p1308_p11, %p1305_p10 }
  0x3b   :  { %1313 = shalt.err (!%p1310_p12)
}
  0x3c   :  { %s1314_s12 = scalar_lea.vmem %s1425_s19, 3072  ;;  %p1319_p0 = scmp.lt.s32.totalorder %s1425_s19, %s1425_s19 }
  0x3d   :  { %p1315_p13 = scmp.ne.s32.totalorder %s1425_s19, %s1314_s12  ;;  %p1320_p1 = scmp.lt.s32.totalorder %s1314_s12, %s1314_s12 }
  0x3f   :  { %p1321_p2 = por %p1320_p1, %p1319_p0 }
  0x41   :  { %p1322_p3 = pnand %p1321_p2, %p1315_p13 }
  0x43   :  { %1325 = shalt.err (!%p1322_p3)
}
  0x44   :  { %s1364_s2 = smov 64   ;;  %s1365_s25 = smov 4  }
  0x45   :  { %60 = dma.hbm_to_vmem [thread:$0]  %s1517_s3, 3072, %s1425_s19, [#allocation11], %s1364_s2, %s1364_s2, %s1365_s25  }
  0x46   :  { %1348 = dma.done.wait [#allocation5], 256  }
  0x47   :  { %1349 = vsyncadd [#allocation5], 4294967040 }
  0x48   :  { %1350 = dma.done.wait [#allocation8], 6144  }
  0x49   :  { %1351 = vsyncadd [#allocation8], 4294961152 }
  0x4a   :  { %1352 = dma.done.wait [#allocation11], 3072  }
  0x4b   :  { %1353 = vsyncadd [#allocation11], 4294964224  ;;  %v1459_v0 = vld [vmem:[#allocation4] sm:$0xff]  ;;  %v1461_v1 = vld [vmem:[#allocation4 + $0x8] sm:$0xff]  ;;  %v1366_v4 = vmov 0.0   ;;  %v1367_v33 = vmov 0  }
  0x4c   :  { %81 = vadd.xlane.f32.xlu0 %v1459_v0  ;;  %v1134_v2 = vld [vmem:[#allocation7 + $0x4] ss:$12 sps:$4 sm:$0xff]   ;;  %v1136_v3 = vld [vmem:[#allocation7] ss:$12 sps:$4 sm:$0xff]   ;;  %1060 = vmatprep.subr.bf16.mxu1 %v1366_v4  ;;  %v1137_v5 = vld [vmem:[#allocation7 + $0x8] ss:$12 sps:$4 sm:$0xff]  }
  0x4d   :  { %v1138_v6 = vld [vmem:[#allocation7 + $0x1c] ss:$12 sps:$4 sm:$0xff]   ;;  %269 = vmatprep.subr.bf16.mxu0 %v1134_v2  ;;  %v1140_v7 = vld [vmem:[#allocation7 + $0x18] ss:$12 sps:$4 sm:$0xff]   ;;  %v1141_v8 = vld [vmem:[#allocation7 + $0x20] ss:$12 sps:$4 sm:$0xff]   ;;  %1061 = vmatpush3.bf16.msra.mxu1 %v1137_v5 }
  0x4e   :  { %270 = vmatpush1.bf16.msra.mxu0 %v1136_v3  ;;  %v1142_v9 = vld [vmem:[#allocation7 + $0x34] ss:$12 sps:$4 sm:$0xff]   ;;  %1062 = vmatprep.subr.bf16.mxu1 %v1366_v4  ;;  %v1144_v10 = vld [vmem:[#allocation7 + $0x30] ss:$12 sps:$4 sm:$0xff]   ;;  %v1145_v11 = vld [vmem:[#allocation7 + $0x38] ss:$12 sps:$4 sm:$0xff]  }
  0x4f   :  { %271 = vmatprep.subr.bf16.mxu0 %v1138_v6  ;;  %v1146_v20 = vld [vmem:[#allocation7 + $0x4c] ss:$12 sps:$4 sm:$0xff]   ;;  %v1148_v21 = vld [vmem:[#allocation7 + $0x48] ss:$12 sps:$4 sm:$0xff]   ;;  %v1149_v22 = vld [vmem:[#allocation7 + $0x50] ss:$12 sps:$4 sm:$0xff]   ;;  %301 = vmatprep.mubr.bf16.mxu0 %v1367_v33 }
  0x50   :  { %83 = vadd.xlane.f32.xlu0 %v1461_v1  ;;  %v1150_v23 = vld [vmem:[#allocation7 + $0x64] ss:$12 sps:$4 sm:$0xff]   ;;  %v1152_v24 = vld [vmem:[#allocation7 + $0x60] ss:$12 sps:$4 sm:$0xff]   ;;  %v1153_v25 = vld [vmem:[#allocation7 + $0x68] ss:$12 sps:$4 sm:$0xff]  }
  0x51   :  { %1063 = vmatpush3.bf16.msra.mxu1 %v1141_v8  ;;  %v1154_v26 = vld [vmem:[#allocation7 + $0x7c] ss:$12 sps:$4 sm:$0xff]   ;;  %v1156_v27 = vld [vmem:[#allocation7 + $0x78] ss:$12 sps:$4 sm:$0xff]   ;;  %v1157_v28 = vld [vmem:[#allocation7 + $0x80] ss:$12 sps:$4 sm:$0xff]  }
  0x52   :  { %272 = vmatpush1.bf16.msra.mxu0 %v1140_v7  ;;  %1064 = vmatprep.subr.bf16.mxu1 %v1366_v4  ;;  %v1158_v29 = vld [vmem:[#allocation7 + $0x94] ss:$12 sps:$4 sm:$0xff]   ;;  %v1160_v30 = vld [vmem:[#allocation7 + $0x90] ss:$12 sps:$4 sm:$0xff]   ;;  %v1161_v31 = vld [vmem:[#allocation7 + $0x98] ss:$12 sps:$4 sm:$0xff]  }
  0x53   :  { %273 = vmatprep.subr.bf16.mxu0 %v1142_v9  ;;  %v1162_v32 = vld [vmem:[#allocation7 + $0xac] ss:$12 sps:$4 sm:$0xff]   ;;  %vm1368_vm0 = vmmov 0   ;;  %v1164_v34 = vld [vmem:[#allocation7 + $0xa8] ss:$12 sps:$4 sm:$0xff]   ;;  %s1369_s3 = smov [#allocation12]  }
  0x54   :  { %1076 = vmatprep.mubr.msk.bf16.mxu1 %vm1368_vm0, %v1366_v4  ;;  %v1165_v35 = vld [vmem:[#allocation7 + $0xb0] ss:$12 sps:$4 sm:$0xff]   ;;  %v1166_v47 = vld [vmem:[#allocation9] ss:$12 sps:$4 sm:$0xff]   ;;  %v1169_v48 = vld [vmem:[#allocation9 + $0x8] ss:$12 sps:$4 sm:$0xff]  }
  0x55   :  { %1065 = vmatpush3.bf16.msra.mxu1 %v1145_v11  ;;  %v1168_v36 = vld [vmem:[#allocation9 + $0x4] ss:$12 sps:$4 sm:$0xff]   ;;  %v1172_v50 = vld [vmem:[#allocation9 + $0x1c] ss:$12 sps:$4 sm:$0xff]   ;;  %v1173_v52 = vld [vmem:[#allocation9 + $0x20] ss:$12 sps:$4 sm:$0xff]  }
  0x56   :  { %274 = vmatpush1.bf16.msra.mxu0 %v1144_v10  ;;  %1066 = vmatprep.subr.bf16.mxu1 %v1366_v4  ;;  %v1170_v51 = vld [vmem:[#allocation9 + $0x18] ss:$12 sps:$4 sm:$0xff]   ;;  %v1176_v53 = vld [vmem:[#allocation9 + $0x34] ss:$12 sps:$4 sm:$0xff]   ;;  %v1174_v54 = vld [vmem:[#allocation9 + $0x30] ss:$12 sps:$4 sm:$0xff]  }
  0x57   :  { %275 = vmatprep.subr.bf16.mxu0 %v1146_v20  ;;  %v1177_v55 = vld [vmem:[#allocation9 + $0x38] ss:$12 sps:$4 sm:$0xff]   ;;  %v1178_v57 = vld [vmem:[#allocation9 + $0x48] ss:$12 sps:$4 sm:$0xff]   ;;  %v1181_v58 = vld [vmem:[#allocation9 + $0x50] ss:$12 sps:$4 sm:$0xff]  }
  0x58   :  { %v1180_v56 = vld [vmem:[#allocation9 + $0x4c] ss:$12 sps:$4 sm:$0xff]   ;;  %v1184_v59 = vld [vmem:[#allocation9 + $0x64] ss:$12 sps:$4 sm:$0xff]   ;;  %v1185_v61 = vld [vmem:[#allocation9 + $0x68] ss:$12 sps:$4 sm:$0xff]  }
  0x59   :  { %1067 = vmatpush3.bf16.msra.mxu1 %v1149_v22  ;;  %v1182_v60 = vld [vmem:[#allocation9 + $0x60] ss:$12 sps:$4 sm:$0xff]   ;;  %v1188_v62 = vld [vmem:[#allocation9 + $0x7c] ss:$12 sps:$4 sm:$0xff]   ;;  %v1186_v63 = vld [vmem:[#allocation9 + $0x78] ss:$12 sps:$4 sm:$0xff]  }
  0x5a   :  { %276 = vmatpush1.bf16.msra.mxu0 %v1148_v21  ;;  %1068 = vmatprep.subr.bf16.mxu1 %v1366_v4  ;;  %v1189_v2 = vld [vmem:[#allocation9 + $0x80] ss:$12 sps:$4 sm:$0xff]   ;;  %v1190_v5 = vld [vmem:[#allocation9 + $0x90] ss:$12 sps:$4 sm:$0xff]   ;;  %v1193_v6 = vld [vmem:[#allocation9 + $0x98] ss:$12 sps:$4 sm:$0xff]  }
  0x5b   :  { %277 = vmatprep.subr.bf16.mxu0 %v1150_v23  ;;  %v1192_v3 = vld [vmem:[#allocation9 + $0x94] ss:$12 sps:$4 sm:$0xff]   ;;  %v1196_v7 = vld [vmem:[#allocation9 + $0xac] ss:$12 sps:$4 sm:$0xff]   ;;  %v1197_v9 = vld [vmem:[#allocation9 + $0xb0] ss:$12 sps:$4 sm:$0xff]  }
  0x5c   :  { %v1194_v8 = vld [vmem:[#allocation9 + $0xa8] ss:$12 sps:$4 sm:$0xff]   ;;  %v1198_v10 = vld [vmem:[#allocation10 + $0x80] sm:$0xff]   ;;  %v1208_v20 = vld [vmem:[#allocation10 + $0x58] sm:$0xff]   ;;  %s922_s15 = sshll.u32 %s1369_s3, 4  ;;  %s923_s15 = int_to_ptr.vmem [resolvable:$true] %s922_s15 }
  0x5d   :  { %1069 = vmatpush3.bf16.msra.mxu1 %v1153_v25  ;;  %v1199_v11 = vld [vmem:[#allocation10 + $0x40] sm:$0xff]   ;;  %v1209_v21 = vld [vmem:[#allocation10 + $0x18] sm:$0xff]   ;;  %v1213_v25 = vld [vmem:[#allocation10 + $0xa8] sm:$0xff]   ;;  %s1326_s16 = scalar_lea.vmem %s923_s15, 256  ;;  %p1331_p5 = scmp.lt.s32.totalorder %s923_s15, %s923_s15 }
  0x5e   :  { %278 = vmatpush1.bf16.msra.mxu0 %v1152_v24  ;;  %1070 = vmatprep.subr.bf16.mxu1 %v1366_v4  ;;  %v1210_v22 = vld [vmem:[#allocation10 + $0xa0] sm:$0xff]   ;;  %p1327_p4 = scmp.ne.s32.totalorder %s923_s15, %s1326_s16  ;;  %p1332_p6 = scmp.lt.s32.totalorder %s1326_s16, %s1326_s16 }
  0x5f   :  { %279 = vmatprep.subr.bf16.mxu0 %v1154_v26  ;;  %v1211_v23 = vld [vmem:[#allocation10 + $0x60] sm:$0xff]   ;;  %v1214_v26 = vld [vmem:[#allocation10 + $0x68] sm:$0xff]  }
  0x60   :  { %v1212_v24 = vld [vmem:[#allocation10 + $0x20] sm:$0xff]   ;;  %p1333_p7 = por %p1332_p6, %p1331_p5 }
  0x61   :  { %1071 = vmatpush3.bf16.msra.mxu1 %v1157_v28  ;;  %v1216_v28 = vld [vmem:[#allocation10 + $0xb0] sm:$0xff]  }
  0x62   :  { %280 = vmatpush1.bf16.msra.mxu0 %v1156_v27  ;;  %1072 = vmatprep.subr.bf16.mxu1 %v1366_v4  ;;  %v1215_v27 = vld [vmem:[#allocation10 + $0x28] sm:$0xff]   ;;  %p1334_p8 = pnand %p1333_p7, %p1327_p4 }
  0x63   :  { %281 = vmatprep.subr.bf16.mxu0 %v1158_v29  ;;  %v1217_v29 = vld [vmem:[#allocation10 + $0x70] sm:$0xff]  }
  0x65   :  { %1073 = vmatpush3.bf16.msra.mxu1 %v1161_v31  ;;  %v1219_v31 = vld [vmem:[#allocation10 + $0xb8] sm:$0xff]  }
  0x66   :  { %282 = vmatpush1.bf16.msra.mxu0 %v1160_v30  ;;  %1074 = vmatprep.subr.bf16.mxu1 %v1366_v4  ;;  %v1218_v30 = vld [vmem:[#allocation10 + $0x30] sm:$0xff]  }
  0x67   :  { %283 = vmatprep.subr.bf16.mxu0 %v1162_v32  ;;  %v1220_v32 = vld [vmem:[#allocation10 + $0x78] sm:$0xff]  }
  0x69   :  { %1075 = vmatpush3.bf16.msra.mxu1 %v1165_v35 }
  0x6a   :  { %284 = vmatpush1.bf16.msra.mxu0 %v1164_v34  ;;  %1080 = vmatprep.subr.bf16.mxu1 %v1366_v4 }
  0x6b   :  { %513 = vmatprep.subr.bf16.mxu0 %v1168_v36 }
  0xd9   :  { %v82_v12 = vpop.xlane.xlu0 %81 }
  0xda   :  { %v86_v13 = vmul.f32 0.0078125, %v82_v12  ;;  %v1200_v12 = vld [vmem:[#allocation10] sm:$0xff]  }
  0xdc   :  { %v88_v14 = vsub.f32 %v1459_v0, %v86_v13  ;;  %v1201_v13 = vld [vmem:[#allocation10 + $0x88] sm:$0xff]  }
  0xdd   :  { %v84_v15 = vpop.xlane.xlu0 %83 }
  0xde   :  { %v87_v16 = vmul.f32 0.0078125, %v84_v15  ;;  %v90_v17 = vmul.f32 %v88_v14, %v88_v14  ;;  %v1203_v15 = vld [vmem:[#allocation10 + $0x8] sm:$0xff]  }
  0xe0   :  { %v89_v18 = vsub.f32 %v1461_v1, %v87_v16  ;;  %92 = vadd.xlane.f32.xlu1 %v90_v17  ;;  %v1204_v16 = vld [vmem:[#allocation10 + $0x90] sm:$0xff]  }
  0xe1   :  { %v1205_v17 = vld [vmem:[#allocation10 + $0x50] sm:$0xff]  }
  0xe2   :  { %v91_v19 = vmul.f32 %v89_v18, %v89_v18 }
  0xe4   :  { %94 = vadd.xlane.f32.xlu1 %v91_v19  ;;  %v1207_v19 = vld [vmem:[#allocation10 + $0x98] sm:$0xff]  }
 0x16d   :  { %v93_v37 = vpop.xlane.xlu1 %92 }
 0x16e   :  { %v96_v38 = vmul.f32 0.0078125, %v93_v37 }
 0x170   :  { %v98_v39 = vadd.f32 1e-05, %v96_v38 }
 0x171   :  { %v95_v40 = vpop.xlane.xlu1 %94 }
 0x172   :  { %v97_v41 = vmul.f32 0.0078125, %v95_v40  ;;  %1222 = vrsqrt.f32 %v98_v39 }
 0x174   :  { %v99_v42 = vadd.f32 1e-05, %v97_v41 }
 0x176   :  { %1224 = vrsqrt.f32 %v99_v42 }
 0x17c   :  { %v1223_v43 = vpop.eup %1222 }
 0x17d   :  { %v102_v45 = vmul.f32 %v1223_v43, %v88_v14  ;;  %v1202_v14 = vld [vmem:[#allocation10 + $0x48] sm:$0xff]  }
 0x180   :  { %v1225_v44 = vpop.eup %1224 }
 0x181   :  { %v103_v46 = vmul.f32 %v1225_v44, %v89_v18  ;;  %v1206_v18 = vld [vmem:[#allocation10 + $0x10] sm:$0xff]  }
 0x183   :  { %v104_v49 = vpack.c.bf16 %v103_v46, %v102_v45 }
 0x185   :  { %302 = vmatmul.mubr.bf16.vlgmr.msra.gmra.mrb[0].mxu0 %v104_v49  ;;  %1077 = vmatmul.mubr.bf16.vlgmr.msra.gmra.mrb[0].mxu1 %v104_v49 }
 0x186   :  { %514 = vmatpush1.bf16.msra.mxu0 %v1166_v47  ;;  %1081 = vmatpush3.bf16.msra.mxu1 %v1169_v48 }
 0x187   :  { %515 = vmatprep.subr.bf16.mxu0 %v1172_v50  ;;  %1082 = vmatprep.subr.bf16.mxu1 %v1366_v4 }
 0x188   :  { %545 = vmatprep.mubr.bf16.mxu0 %v1367_v33  ;;  %1096 = vmatprep.mubr.msk.bf16.mxu1 %vm1368_vm0, %v1366_v4  ;;  %v1221_v33 = vld [vmem:[#allocation10 + $0x38] sm:$0xff]  }
 0x18a   :  { %516 = vmatpush1.bf16.msra.mxu0 %v1170_v51  ;;  %1083 = vmatpush3.bf16.msra.mxu1 %v1173_v52 }
 0x18b   :  { %517 = vmatprep.subr.bf16.mxu0 %v1176_v53  ;;  %1084 = vmatprep.subr.bf16.mxu1 %v1366_v4 }
 0x18e   :  { %518 = vmatpush1.bf16.msra.mxu0 %v1174_v54  ;;  %1085 = vmatpush3.bf16.msra.mxu1 %v1177_v55 }
 0x18f   :  { %519 = vmatprep.subr.bf16.mxu0 %v1180_v56  ;;  %1086 = vmatprep.subr.bf16.mxu1 %v1366_v4 }
 0x192   :  { %520 = vmatpush1.bf16.msra.mxu0 %v1178_v57  ;;  %1087 = vmatpush3.bf16.msra.mxu1 %v1181_v58 }
 0x193   :  { %521 = vmatprep.subr.bf16.mxu0 %v1184_v59  ;;  %1088 = vmatprep.subr.bf16.mxu1 %v1366_v4 }
 0x196   :  { %522 = vmatpush1.bf16.msra.mxu0 %v1182_v60  ;;  %1089 = vmatpush3.bf16.msra.mxu1 %v1185_v61 }
 0x197   :  { %523 = vmatprep.subr.bf16.mxu0 %v1188_v62  ;;  %1090 = vmatprep.subr.bf16.mxu1 %v1366_v4 }
 0x19a   :  { %524 = vmatpush1.bf16.msra.mxu0 %v1186_v63  ;;  %1091 = vmatpush3.bf16.msra.mxu1 %v1189_v2 }
 0x19b   :  { %525 = vmatprep.subr.bf16.mxu0 %v1192_v3  ;;  %1092 = vmatprep.subr.bf16.mxu1 %v1366_v4 }
 0x19e   :  { %526 = vmatpush1.bf16.msra.mxu0 %v1190_v5  ;;  %1093 = vmatpush3.bf16.msra.mxu1 %v1193_v6 }
 0x19f   :  { %527 = vmatprep.subr.bf16.mxu0 %v1196_v7  ;;  %1094 = vmatprep.subr.bf16.mxu1 %v1366_v4 }
 0x1a2   :  { %528 = vmatpush1.bf16.msra.mxu0 %v1194_v8  ;;  %1095 = vmatpush3.bf16.msra.mxu1 %v1197_v9 }
 0x1a3   :  { %1100 = vmatprep.subr.bf16.mxu1 %v1366_v4  ;;  %1029 = vmatprep.subr.bf16.mxu0 %v1199_v11 }
 0x1a5   :  { %546 = vmatmul.mubr.bf16.vlgmr.msra.gmra.mrb[4].mxu0 %v104_v49  ;;  %1097 = vmatmul.mubr.bf16.vlgmr.msra.gmra.mrb[4].mxu1 %v104_v49 }
 0x1a6   :  { %1116 = vmatprep.mubr.msk.bf16.mxu1 %vm1368_vm0, %v1366_v4  ;;  %1101 = vmatpush3.bf16.msra.mxu1 %v1198_v10 }
 0x1a7   :  { %1102 = vmatprep.subr.bf16.mxu1 %v1366_v4  ;;  %1030 = vmatpush3.bf16.msra.mxu0 %v1200_v12 }
 0x1a8   :  { %1031 = vmatprep.subr.bf16.mxu0 %v1202_v14 }
 0x1aa   :  { %1103 = vmatpush3.bf16.msra.mxu1 %v1201_v13 }
 0x1ab   :  { %1104 = vmatprep.subr.bf16.mxu1 %v1366_v4  ;;  %1032 = vmatpush3.bf16.msra.mxu0 %v1203_v15 }
 0x1ac   :  { %1033 = vmatprep.subr.bf16.mxu0 %v1205_v17 }
 0x1ae   :  { %1105 = vmatpush3.bf16.msra.mxu1 %v1204_v16 }
 0x1af   :  { %1106 = vmatprep.subr.bf16.mxu1 %v1366_v4  ;;  %1034 = vmatpush3.bf16.msra.mxu0 %v1206_v18 }
 0x1b0   :  { %1035 = vmatprep.subr.bf16.mxu0 %v1208_v20 }
 0x1b2   :  { %1107 = vmatpush3.bf16.msra.mxu1 %v1207_v19 }
 0x1b3   :  { %1108 = vmatprep.subr.bf16.mxu1 %v1366_v4  ;;  %1036 = vmatpush3.bf16.msra.mxu0 %v1209_v21 }
 0x1b4   :  { %1037 = vmatprep.subr.bf16.mxu0 %v1211_v23 }
 0x1b6   :  { %1109 = vmatpush3.bf16.msra.mxu1 %v1210_v22 }
 0x1b7   :  { %1110 = vmatprep.subr.bf16.mxu1 %v1366_v4  ;;  %1038 = vmatpush3.bf16.msra.mxu0 %v1212_v24 }
 0x1b8   :  { %1039 = vmatprep.subr.bf16.mxu0 %v1214_v26 }
 0x1ba   :  { %1111 = vmatpush3.bf16.msra.mxu1 %v1213_v25 }
 0x1bb   :  { %1112 = vmatprep.subr.bf16.mxu1 %v1366_v4  ;;  %1040 = vmatpush3.bf16.msra.mxu0 %v1215_v27 }
 0x1bc   :  { %1041 = vmatprep.subr.bf16.mxu0 %v1217_v29 }
 0x1be   :  { %1113 = vmatpush3.bf16.msra.mxu1 %v1216_v28 }
 0x1bf   :  { %1114 = vmatprep.subr.bf16.mxu1 %v1366_v4  ;;  %1042 = vmatpush3.bf16.msra.mxu0 %v1218_v30 }
 0x1c0   :  { %1043 = vmatprep.subr.bf16.mxu0 %v1220_v32 }
 0x1c2   :  { %1115 = vmatpush3.bf16.msra.mxu1 %v1219_v31 }
 0x1c3   :  { %1044 = vmatpush3.bf16.msra.mxu0 %v1221_v33 }
 0x258   :  { %v303_v34 = vpop.f32.mrb[0].mxu0  ;;  %v346_v35 = vpop.f32.mrb[0].mxu1 }
 0x259   :  { %v305_v36 = vpop.f32.mrb[1].mxu0  ;;  %v1078_v37 = vpop.f32.mrb[1].mxu1 }
 0x25a   :  { %v307_v38 = vpop.f32.mrb[2].mxu0  ;;  %v349_v39 = vpop.f32.mrb[2].mxu1 }
 0x25b   :  { %v597_v40 = vpack.c.bf16 %v307_v38, %v303_v34  ;;  %v599_v41 = vpack.c.bf16 %v349_v39, %v346_v35  ;;  %v309_v42 = vpop.f32.mrb[3].mxu0  ;;  %v1079_v43 = vpop.f32.mrb[3].mxu1 }
 0x25c   :  { %v598_v44 = vpack.c.bf16 %v309_v42, %v305_v36 }
 0x278   :  { %v547_v45 = vpop.f32.mrb[4].mxu0  ;;  %v590_v4 = vpop.f32.mrb[4].mxu1 }
 0x279   :  { %v549_v46 = vpop.f32.mrb[5].mxu0  ;;  %v1098_v47 = vpop.f32.mrb[5].mxu1 }
 0x27a   :  { %v551_v48 = vpop.f32.mrb[6].mxu0  ;;  %v593_v49 = vpop.f32.mrb[6].mxu1 }
 0x27b   :  { %v600_v50 = vpack.c.bf16 %v551_v48, %v547_v45  ;;  %v602_v51 = vpack.c.bf16 %v593_v49, %v590_v4  ;;  %v553_v52 = vpop.f32.mrb[7].mxu0  ;;  %v1099_v53 = vpop.f32.mrb[7].mxu1 }
 0x27c   :  { %v601_v54 = vpack.c.bf16 %v553_v52, %v549_v46 }
 0x27d   :  { %v984_v55 = vmul.bf16 3216621497, %v600_v50  ;;  %v986_v56 = vmul.bf16 3216621497, %v602_v51 }
 0x27e   :  { %v985_v57 = vmul.bf16 3216621497, %v601_v54 }
 0x27f   :  { %1226 = vpow.bf16 %v984_v55 }
 0x280   :  { %1228 = vpow.bf16 %v986_v56 }
 0x281   :  { %1230 = vpow.bf16 %v985_v57 }
 0x28a   :  { %v1227_v58 = vpop.eup %1226 }
 0x28b   :  { %v1229_v59 = vpop.eup %1228  ;;  %v615_v60 = vadd.bf16 1065369472, %v1227_v58 }
 0x28c   :  { %v1231_v61 = vpop.eup %1230  ;;  %v617_v62 = vadd.bf16 1065369472, %v1229_v59 }
 0x28d   :  { %1232 = vrcp.bf16 %v615_v60  ;;  %v616_v63 = vadd.bf16 1065369472, %v1231_v61 }
 0x28e   :  { %1234 = vrcp.bf16 %v617_v62 }
 0x28f   :  { %1236 = vrcp.bf16 %v616_v63 }
 0x298   :  { %v1233_v2 = vpop.eup %1232 }
 0x299   :  { %v1235_v3 = vpop.eup %1234  ;;  %v619_v5 = vmul.bf16 1065369472, %v1233_v2 }
 0x29a   :  { %v1237_v6 = vpop.eup %1236  ;;  %v623_v7 = vmul.bf16 1065369472, %v1235_v3 }
 0x29b   :  { %v624_v8 = vmul.bf16 %v619_v5, %v600_v50  ;;  %v621_v9 = vmul.bf16 1065369472, %v1237_v6 }
 0x29c   :  { %v626_v10 = vmul.bf16 %v623_v7, %v602_v51 }
 0x29d   :  { %v627_v11 = vmul.bf16 %v624_v8, %v597_v40  ;;  %v625_v12 = vmul.bf16 %v621_v9, %v601_v54 }
 0x29e   :  { %v629_v13 = vmul.bf16 %v626_v10, %v599_v41 }
 0x29f   :  { %v628_v14 = vmul.bf16 %v625_v12, %v598_v44 }
 0x2a0   :  { %1117 = vmatmul.mubr.bf16.vlgmr.msra.gmra.mrb[8].mxu1 %v629_v13 }
 0x2a1   :  { %856 = vmatprep.mubr.bf16.mxu0 %v628_v14 }
 0x2a2   :  { %857 = vmatmul.mubr.bf16.vlgmr.msra.gmra.mrb[8].mxu0 %v627_v11 }
 0x373   :  { %v899_v15 = vpop.f32.mrb[8].mxu1 }
 0x374   :  { %v1118_v16 = vpop.f32.mrb[9].mxu1 }
 0x375   :  { %v1045_v17 = vpop.f32.mrb[8].mxu0  ;;  %v902_v18 = vpop.f32.mrb[10].mxu1 }
 0x376   :  { %v1046_v19 = vpop.f32.mrb[9].mxu0  ;;  %v1119_v20 = vpop.f32.mrb[11].mxu1 }
 0x377   :  { %v1047_v21 = vadd.f32 %v1046_v19, %v1045_v17  ;;  %v1048_v22 = vpop.f32.mrb[10].mxu0 }
 0x378   :  { %v1049_v23 = vpop.f32.mrb[11].mxu0 }
 0x379   :  { %v900_v24 = vadd.f32 %v1047_v21, %v899_v15  ;;  %v1050_v25 = vadd.f32 %v1049_v23, %v1048_v22 }
 0x37b   :  { %v906_v26 = vadd.f32 %v900_v24, %v1459_v0  ;;  %v903_v27 = vadd.f32 %v1050_v25, %v902_v18 }
 0x37d   :  { %915 = vst [vmem:[#allocation12] sm:$0xff] %v906_v26  ;;  %v907_v28 = vadd.f32 %v903_v27, %v1461_v1 }
 0x37f   :  { %916 = vst [vmem:[#allocation12 + $0x8] sm:$0xff] %v907_v28 }
 0x380   :  { %1337 = shalt.err (!%p1334_p8)
}
 0x381   :  { %s1338_s19 = scalar_lea.hbm %s1518_s4, 256 }
 0x382   :  { %p1339_p9 = scmp.ne.s32.totalorder %s1518_s4, %s1338_s19  ;;  %p1342_p10 = scmp.lt.u32.totalorder %s1338_s19, %s1518_s4 }
 0x384   :  { %p1344_p11 = pnand %p1342_p10, %p1339_p9 }
 0x386   :  { %1347 = shalt.err (!%p1344_p11)
}
 0x387   :  { %928 = dma.vmem_to_hbm [thread:$0]  %s923_s15, 256, %s1518_s4, [#allocation6], %s1360_s1, %s1360_s1, %s1361_s13  }
 0x388   :  { %1354 = dma.done.wait [#allocation6], 256  }
 0x389   :  { %1355 = vsyncadd [#allocation6], 4294967040 }
 0x38a   :  { %932 = vsyncpa [#allocation5], 1 }
 0x38b   :  { %933 = vsyncpa [#allocation8], 1 }
 0x38c   :  { %934 = vsyncpa [#allocation11], 1 }
 0x38d   :  { %935 = vsyncpa [#allocation6], 1 }

</bundles_post_ra>
